<compile_context>
chip_gen: v7x
topology: tpu7x:2x2x1
jax: 0.10.0
libtpu: 0.0.40
codegen_flags: <defaults>
</compile_context>

<pallas_src>
import jax
import jax.numpy as jnp
from jax import lax
from jax.experimental import pallas as pl
from jax.experimental.pallas import tpu as pltpu


# ----------------------------- config (small, TPU-friendly) -----------------
D_MODEL = 128          # config.d_model
FFN_HIDDEN = 256       # config.ffn_config.ffn_hidden_size (intermediate size I)
NUM_EXPERTS = 8        # config.ffn_config.moe_num_experts
TOP_K = 2              # config.ffn_config.moe_top_k
BATCH = 2
SEQ = 16


# ----------------------------- tiling helpers --------------------------------
def _pick_tm(T):
    # Largest token tile up to 256, but aim for >=2 token tiles so the
    # "parallel" token axis actually shards across v7x's two TensorCores;
    # keep TM a multiple of 16 for bf16 sublane packing (minimum 8).
    half = -(-T // 2)
    tm = min(256, half)
    if tm >= 16:
        tm = (tm // 16) * 16
    else:
        tm = 8
    return tm


def _pick_ti(I):
    # Intermediate-dim tile.  At production DBRX dims use 512 (v7x, 64 MiB
    # VMEM/TC) or 1024 (v5e/v6e with raised vmem limit); at toy dims pick the
    # largest 128-multiple divisor that still gives >= 2 I-tiles.
    for cand in (512, 256, 128):
        if I > cand and I % cand == 0:
            return cand
    return I


def _vmem_limit_bytes(tm, ti, D, E):
    bf16, f32 = 2, 4
    lanes_e = max(E, 128)                      # trailing dim lane-padded in VMEM
    per_step = (2 * tm * D * bf16              # x tile (double-buffered)
                + 2 * D * ti * bf16            # w1 tile
                + 2 * D * ti * bf16            # w3 tile
                + 2 * ti * D * bf16            # w2 tile
                + 2 * tm * lanes_e * f32       # routing-weight block
                + 2 * tm * D * f32)            # resident f32 output block
    # Clamp to a value legal on every generation (v7x: 64 MiB physical/TC).
    return int(min(56 * 1024 * 1024, max(32 * 1024 * 1024, 2 * per_step)))


# ----------------------------- fused MoE kernel ------------------------------
def _moe_kernel(aids_ref, nact_ref, x_ref, w1_ref, w3_ref, w2_ref, rw_ref,
                o_ref):
    # grid = (token_tiles, expert_slots, I_tiles); output block index depends
    # only on the token tile -> resident f32 accumulator across (e, i).
    e = pl.program_id(1)
    i = pl.program_id(2)

    @pl.when((e == 0) & (i == 0))
    def _():
        o_ref[...] = jnp.zeros_like(o_ref)

    # Only compute for active (compacted) expert slots.
    @pl.when(e < nact_ref[0])
    def _():
        x = x_ref[...]                                          # (TM, D) bf16
        # Per-I-tile gate / up projections: bf16 MXU operands, f32 acc.
        gate = jnp.dot(x, w1_ref[...],
                       preferred_element_type=jnp.float32)      # (TM, TI)
        up = jnp.dot(x, w3_ref[...],
                     preferred_element_type=jnp.float32)        # (TM, TI)
        act = (gate * jax.nn.sigmoid(gate)) * up                # f32 VPU/EUP
        # Partial down projection for this I-tile.
        part = jnp.dot(act.astype(w2_ref.dtype), w2_ref[...],
                       preferred_element_type=jnp.float32)      # (TM, D)
        # Routing weight for this slot: select column e of the resident
        # lane-dense (TM, E) block (XLU reduce, free-ish slot).
        lane = lax.broadcasted_iota(jnp.int32, rw_ref.shape, 1)
        rw_col = jnp.sum(jnp.where(lane == e, rw_ref[...], 0.0),
                         axis=1, keepdims=True)                 # (TM, 1)
        o_ref[...] += rw_col * part                             # f32 accumulate


def fused_moe(x_bf, w1_t, w3_t, w2_t, rw, active_ids, n_active_arr, *,
              tm, ti, vmem_limit, cost_estimate):
    T, D = x_bf.shape
    E, _, I = w1_t.shape
    grid = (T // tm, E, I // ti)
    return pl.pallas_call(
        _moe_kernel,
        out_shape=jax.ShapeDtypeStruct((T, D), jnp.float32),
        grid_spec=pltpu.PrefetchScalarGridSpec(
            num_scalar_prefetch=2,   # active_ids (E,), n_active (1,) -> SMEM
            grid=grid,
            in_specs=[
                # tokens: resident across (e, i)
                pl.BlockSpec((tm, D), lambda t, e, i, aids, nact: (t, 0)),
                # gate weights (E, D, I): I-tiled, expert via compacted ids
                pl.BlockSpec((pl.Squeezed(), D, ti),
                             lambda t, e, i, aids, nact: (aids[e], 0, i)),
                # up weights (E, D, I)
                pl.BlockSpec((pl.Squeezed(), D, ti),
                             lambda t, e, i, aids, nact: (aids[e], 0, i)),
                # down-proj weights (E, I, D)
                pl.BlockSpec((pl.Squeezed(), ti, D),
                             lambda t, e, i, aids, nact: (aids[e], i, 0)),
                # routing weights: one lane-dense (tm, E) block per token tile
                pl.BlockSpec((tm, E), lambda t, e, i, aids, nact: (t, 0)),
            ],
            out_specs=pl.BlockSpec((tm, D), lambda t, e, i, aids, nact: (t, 0)),
        ),
        compiler_params=pltpu.CompilerParams(
            # token tiles shard across TCs (v7x megacore); expert and I axes
            # are reductions into the resident output -> arbitrary, innermost.
            dimension_semantics=("parallel", "arbitrary", "arbitrary"),
            vmem_limit_bytes=vmem_limit,
        ),
        cost_estimate=cost_estimate,
    )(active_ids, n_active_arr, x_bf, w1_t, w3_t, w2_t, rw)


# ----------------------------- DbrxMoE forward -------------------------------
def dbrx_moe_forward(hidden_states, w_router, w13, w2, top_k=TOP_K):
    orig_shape = hidden_states.shape
    d_model = orig_shape[-1]
    x = hidden_states.reshape(-1, d_model)                        # (T, D)
    T = x.shape[0]
    E, two_I, _ = w13.shape
    I = two_I // 2

    # Router: tiny (T, D) @ (D, E) GEMM -> plain XLA (no Pallas call; E << 128
    # would force masked stores and a second HBM pass of x).
    logits = jnp.dot(x.astype(jnp.float32),
                     jnp.transpose(w_router).astype(jnp.float32))  # (T, E)

    # Top-k softmax routing with renormalization (FusedMoE, renormalize=True).
    probs = jax.nn.softmax(logits, axis=-1)
    topk_w, topk_ids = lax.top_k(probs, top_k)
    topk_w = topk_w / jnp.sum(topk_w, axis=-1, keepdims=True)
    dense_w = jnp.zeros((T, E), jnp.float32).at[
        jnp.arange(T)[:, None], topk_ids
    ].set(topk_w)

    # --- active-expert compaction (expert skipping via scalar prefetch) ---
    expert_load = jnp.zeros((E,), jnp.int32).at[topk_ids.reshape(-1)].add(1)
    active = expert_load > 0
    n_active = jnp.sum(active.astype(jnp.int32))
    order = jnp.argsort(
        jnp.where(active, jnp.arange(E), E + jnp.arange(E))
    ).astype(jnp.int32)
    slot = jnp.arange(E, dtype=jnp.int32)
    last_active = order[jnp.maximum(n_active - 1, 0)]
    # Padded slots repeat the last active id -> no extra weight DMA (index_map
    # revisits the same block); the compute is gated off with pl.when.
    active_ids = jnp.where(slot < n_active, order, last_active).astype(jnp.int32)
    n_active_arr = jnp.reshape(n_active, (1,)).astype(jnp.int32)

    # Routing weights in compacted slot order, one lane-dense (T, E) array.
    rw = dense_w[:, active_ids]
    rw = jnp.where((slot < n_active)[None, :], rw, 0.0)

    # Wrapper-side layout plumbing: split w13 into gate/up and pre-transpose so
    # every kernel matmul is lane-dense with no in-kernel transposes.
    w1_t = jnp.transpose(w13[:, :I, :], (0, 2, 1)).astype(jnp.bfloat16)  # (E, D, I)
    w3_t = jnp.transpose(w13[:, I:, :], (0, 2, 1)).astype(jnp.bfloat16)  # (E, D, I)
    w2_t = jnp.transpose(w2, (0, 2, 1)).astype(jnp.bfloat16)             # (E, I, D)
    x_bf = x.astype(jnp.bfloat16)

    # Tile sizes + VMEM limit (per-generation tuning left as TODO above).
    tm = _pick_tm(T)
    ti = _pick_ti(I)
    vmem_limit = _vmem_limit_bytes(tm, ti, d_model, E)

    # Pad tokens to a multiple of tm (no silent truncation).
    T_pad = pl.cdiv(T, tm) * tm
    if T_pad != T:
        x_bf = jnp.pad(x_bf, ((0, T_pad - T), (0, 0)))
        rw = jnp.pad(rw, ((0, T_pad - T), (0, 0)))

    cost_estimate = pl.CostEstimate(
        flops=int(6 * T_pad * top_k * d_model * I),
        transcendentals=int(T_pad * top_k * I),
        bytes_accessed=int((T_pad // tm) * E * 3 * d_model * I * 2
                           + T_pad * d_model * (2 + 4) + T_pad * E * 4),
    )

    out = fused_moe(x_bf, w1_t, w3_t, w2_t, rw, active_ids, n_active_arr,
                    tm=tm, ti=ti, vmem_limit=vmem_limit,
                    cost_estimate=cost_estimate)
    out = out[:T]
    return out.astype(hidden_states.dtype).reshape(orig_shape)


# ----------------------------- pure-JAX reference ----------------------------
def dbrx_moe_reference(hidden_states, w_router, w13, w2, top_k=TOP_K):
    orig_shape = hidden_states.shape
    d_model = orig_shape[-1]
    x = hidden_states.reshape(-1, d_model).astype(jnp.float32)
    E, two_I, _ = w13.shape
    I = two_I // 2

    logits = x @ jnp.transpose(w_router).astype(jnp.float32)
    probs = jax.nn.softmax(logits, axis=-1)
    topk_w, topk_ids = lax.top_k(probs, top_k)
    topk_w = topk_w / jnp.sum(topk_w, axis=-1, keepdims=True)
    T = x.shape[0]
    dense_w = jnp.zeros((T, E), jnp.float32).at[
        jnp.arange(T)[:, None], topk_ids
    ].set(topk_w)

    gate = jnp.einsum("td,eid->tei", x, w13[:, :I, :])
    up = jnp.einsum("td,eid->tei", x, w13[:, I:, :])
    act = gate * jax.nn.sigmoid(gate) * up
    expert_out = jnp.einsum("tei,edi->ted", act, w2)
    out = jnp.einsum("te,ted->td", dense_w, expert_out)
    return out.astype(hidden_states.dtype).reshape(orig_shape)


# ----------------------------- main ------------------------------------------
if __name__ == "__main__":
    key = jax.random.PRNGKey(0)
    k_x, k_r, k_w13, k_w2 = jax.random.split(key, 4)

    hidden_states = jax.random.normal(
        k_x, (BATCH, SEQ, D_MODEL), dtype=jnp.float32
    )
    # Router: ReplicatedLinear(d_model -> num_experts), no bias -> (E, D).
    w_router = jax.random.normal(k_r, (NUM_EXPERTS, D_MODEL), jnp.float32) * 0.05
    # FusedMoE weights: w13 = [w1; v1] -> (E, 2I, D), w2 -> (E, D, I).
    w13 = jax.random.normal(
        k_w13, (NUM_EXPERTS, 2 * FFN_HIDDEN, D_MODEL), jnp.float32
    ) * 0.05
    w2 = jax.random.normal(
        k_w2, (NUM_EXPERTS, D_MODEL, FFN_HIDDEN), jnp.float32
    ) * 0.05

    fwd = jax.jit(dbrx_moe_forward)
    out = fwd(hidden_states, w_router, w13, w2)
    out = jax.block_until_ready(out)

    ref = dbrx_moe_reference(hidden_states, w_router, w13, w2)
    assert out.shape == hidden_states.shape
    # bf16 MXU operands vs f32 reference -> loose-but-meaningful tolerance.
    assert jnp.allclose(out, ref, atol=5e-2, rtol=5e-2), "mismatch vs reference"

    print("KERNEL_OK")
</pallas_src>

<mosaic_0001>
module attributes {stable_mosaic.version = 11 : i64} {
  func.func private @main(%arg0: i32) attributes {dimension_semantics = [#tpu.dimension_semantics<core_parallel>], iteration_bounds = array<i64: 2>, tpu.core_type = #tpu.core_type<sc_scalar_subcore>, window_params = []} {
    return
  }
}

module attributes {stable_mosaic.version = 11 : i64} {
  func.func private @main(%arg0: i32) attributes {dimension_semantics = [#tpu.dimension_semantics<core_parallel>], iteration_bounds = array<i64: 2>, tpu.core_type = #tpu.core_type<sc_scalar_subcore>, window_params = []} {
    return
  }
}

module attributes {stable_mosaic.version = 11 : i64} {
  func.func @_moe_kernel(%arg0: i32, %arg1: i32, %arg2: i32, %arg3: memref<8xi32, #tpu.memory_space<smem>>, %arg4: memref<1xi32, #tpu.memory_space<smem>>, %arg5: memref<16x128xbf16, #tpu.memory_space<vmem>>, %arg6: memref<1x128x128xbf16, #tpu.memory_space<vmem>>, %arg7: memref<1x128x128xbf16, #tpu.memory_space<vmem>>, %arg8: memref<1x128x128xbf16, #tpu.memory_space<vmem>>, %arg9: memref<16x8xf32, #tpu.memory_space<vmem>>, %arg10: memref<16x128xf32, #tpu.memory_space<vmem>>) attributes {dimension_semantics = [#tpu.dimension_semantics<parallel>, #tpu.dimension_semantics<arbitrary>, #tpu.dimension_semantics<arbitrary>], iteration_bounds = array<i64: 2, 8, 2>, scalar_prefetch = 2 : i64, scratch_operands = 0 : i64, tpu.core_type = #tpu.core_type<tc>, window_params = [{transform_indices = @transform_0, window_bounds = array<i64: 16, 128>}, {transform_indices = @transform_1, window_bounds = array<i64: 1, 128, 128>}, {transform_indices = @transform_2, window_bounds = array<i64: 1, 128, 128>}, {transform_indices = @transform_3, window_bounds = array<i64: 1, 128, 128>}, {transform_indices = @transform_4, window_bounds = array<i64: 16, 8>}, {transform_indices = @transform_5, window_bounds = array<i64: 16, 128>}]} {
    %c0_i32 = arith.constant 0 : i32
    %0 = arith.cmpi eq, %arg1, %c0_i32 : i32
    %c0_i32_0 = arith.constant 0 : i32
    %1 = arith.cmpi eq, %arg2, %c0_i32_0 : i32
    %2 = arith.andi %0, %1 : i1
    %3 = arith.extui %2 : i1 to i32
    %c0_i32_1 = arith.constant 0 : i32
    %4 = arith.cmpi ne, %3, %c0_i32_1 : i32
    scf.if %4 {
      %cst = arith.constant 0.000000e+00 : f32
      %9 = vector.broadcast %cst : f32 to vector<16x128xf32>
      %c0_3 = arith.constant 0 : index
      %c0_4 = arith.constant 0 : index
      %10 = vector.load %arg10[%c0_3, %c0_4] : memref<16x128xf32, #tpu.memory_space<vmem>>, vector<16x128xf32>
      tpu.vector_store %arg10[%c0_3, %c0_4], %9 {strides = array<i32>} : memref<16x128xf32, #tpu.memory_space<vmem>>, vector<16x128xf32>,
    } else {
    }
    %c0 = arith.constant 0 : index
    %5 = memref.load %arg4[%c0] : memref<1xi32, #tpu.memory_space<smem>>
    %6 = arith.cmpi slt, %arg1, %5 : i32
    %7 = arith.extui %6 : i1 to i32
    %c0_i32_2 = arith.constant 0 : i32
    %8 = arith.cmpi ne, %7, %c0_i32_2 : i32
    scf.if %8 {
      %c0_3 = arith.constant 0 : index
      %c0_4 = arith.constant 0 : index
      %9 = vector.load %arg5[%c0_3, %c0_4] : memref<16x128xbf16, #tpu.memory_space<vmem>>, vector<16x128xbf16>
      %c0_5 = arith.constant 0 : index
      %c0_6 = arith.constant 0 : index
      %c0_7 = arith.constant 0 : index
      %10 = vector.load %arg6[%c0_5, %c0_6, %c0_7] : memref<1x128x128xbf16, #tpu.memory_space<vmem>>, vector<1x128x128xbf16>
      %11 = vector.shape_cast %10 : vector<1x128x128xbf16> to vector<128x128xbf16>
      %cst = arith.constant dense<0.000000e+00> : vector<16x128xf32>
      %12 = tpu.matmul %9, %11, %cst {dimension_numbers = #tpu.dot_dimension_numbers<[1], [0], [0], [1], [0, 0, 1, 1], [], []>} : vector<16x128xbf16>, vector<128x128xbf16>, vector<16x128xf32> -> vector<16x128xf32>
      %c0_8 = arith.constant 0 : index
      %c0_9 = arith.constant 0 : index
      %c0_10 = arith.constant 0 : index
      %13 = vector.load %arg7[%c0_8, %c0_9, %c0_10] : memref<1x128x128xbf16, #tpu.memory_space<vmem>>, vector<1x128x128xbf16>
      %14 = vector.shape_cast %13 : vector<1x128x128xbf16> to vector<128x128xbf16>
      %cst_11 = arith.constant dense<0.000000e+00> : vector<16x128xf32>
      %15 = tpu.matmul %9, %14, %cst_11 {dimension_numbers = #tpu.dot_dimension_numbers<[1], [0], [0], [1], [0, 0, 1, 1], [], []>} : vector<16x128xbf16>, vector<128x128xbf16>, vector<16x128xf32> -> vector<16x128xf32>
      %16 = arith.negf %12 : vector<16x128xf32>
      %17 = math.exp %16 : vector<16x128xf32>
      %cst_12 = arith.constant 1.000000e+00 : f32
      %18 = vector.broadcast %cst_12 : f32 to vector<16x128xf32>
      %19 = arith.addf %18, %17 : vector<16x128xf32>
      %20 = arith.divf %18, %19 : vector<16x128xf32>
      %21 = arith.mulf %12, %20 : vector<16x128xf32>
      %22 = arith.mulf %21, %15 : vector<16x128xf32>
      %23 = arith.truncf %22 : vector<16x128xf32> to vector<16x128xbf16>
      %c0_13 = arith.constant 0 : index
      %c0_14 = arith.constant 0 : index
      %c0_15 = arith.constant 0 : index
      %24 = vector.load %arg8[%c0_13, %c0_14, %c0_15] : memref<1x128x128xbf16, #tpu.memory_space<vmem>>, vector<1x128x128xbf16>
      %25 = vector.shape_cast %24 : vector<1x128x128xbf16> to vector<128x128xbf16>
      %cst_16 = arith.constant dense<0.000000e+00> : vector<16x128xf32>
      %26 = tpu.matmul %23, %25, %cst_16 {dimension_numbers = #tpu.dot_dimension_numbers<[1], [0], [0], [1], [0, 0, 1, 1], [], []>} : vector<16x128xbf16>, vector<128x128xbf16>, vector<16x128xf32> -> vector<16x128xf32>
      %27 = tpu.iota {dimensions = array<i32: 1>} : vector<16x8xi32>
      %28 = vector.broadcast %arg1 : i32 to vector<16x8xi32>
      %29 = arith.cmpi eq, %27, %28 : vector<16x8xi32>
      %c0_17 = arith.constant 0 : index
      %c0_18 = arith.constant 0 : index
      %30 = vector.load %arg9[%c0_17, %c0_18] : memref<16x8xf32, #tpu.memory_space<vmem>>, vector<16x8xf32>
      %cst_19 = arith.constant 0.000000e+00 : f32
      %31 = vector.broadcast %cst_19 : f32 to vector<16x8xf32>
      %32 = arith.select %29, %30, %31 : vector<16x8xi1>, vector<16x8xf32>
      %cst_20 = arith.constant dense<0.000000e+00> : vector<16xf32>
      %33 = vector.multi_reduction <add>, %32, %cst_20 [1] : vector<16x8xf32> to vector<16xf32>
      %34 = vector.shape_cast %33 : vector<16xf32> to vector<16x1xf32>
      %c0_21 = arith.constant 0 : index
      %c0_22 = arith.constant 0 : index
      %35 = vector.load %arg10[%c0_21, %c0_22] : memref<16x128xf32, #tpu.memory_space<vmem>>, vector<16x128xf32>
      %36 = vector.broadcast %34 : vector<16x1xf32> to vector<16x128xf32>
      %37 = arith.mulf %36, %26 : vector<16x128xf32>
      %38 = arith.addf %35, %37 : vector<16x128xf32>
      %c0_23 = arith.constant 0 : index
      %c0_24 = arith.constant 0 : index
      %39 = vector.load %arg10[%c0_23, %c0_24] : memref<16x128xf32, #tpu.memory_space<vmem>>, vector<16x128xf32>
      tpu.vector_store %arg10[%c0_23, %c0_24], %38 {strides = array<i32>} : memref<16x128xf32, #tpu.memory_space<vmem>>, vector<16x128xf32>,
    } else {
    }
    return
  }
  func.func @transform_0(%arg0: i32, %arg1: i32, %arg2: i32, %arg3: memref<8xi32, #tpu.memory_space<smem>>, %arg4: memref<1xi32, #tpu.memory_space<smem>>) -> (i32, i32) {
    %c0_i32 = arith.constant 0 : i32
    %c0_i32_0 = arith.constant 0 : i32
    return %arg0, %c0_i32 : i32, i32
  }
  func.func @transform_1(%arg0: i32, %arg1: i32, %arg2: i32, %arg3: memref<8xi32, #tpu.memory_space<smem>>, %arg4: memref<1xi32, #tpu.memory_space<smem>>) -> (i32, i32, i32) {
    %0 = arith.index_cast %arg1 : i32 to index
    %1 = memref.load %arg3[%0] : memref<8xi32, #tpu.memory_space<smem>>
    %c0_i32 = arith.constant 0 : i32
    %c0_i32_0 = arith.constant 0 : i32
    return %1, %c0_i32, %arg2 : i32, i32, i32
  }
  func.func @transform_2(%arg0: i32, %arg1: i32, %arg2: i32, %arg3: memref<8xi32, #tpu.memory_space<smem>>, %arg4: memref<1xi32, #tpu.memory_space<smem>>) -> (i32, i32, i32) {
    %0 = arith.index_cast %arg1 : i32 to index
    %1 = memref.load %arg3[%0] : memref<8xi32, #tpu.memory_space<smem>>
    %c0_i32 = arith.constant 0 : i32
    %c0_i32_0 = arith.constant 0 : i32
    return %1, %c0_i32, %arg2 : i32, i32, i32
  }
  func.func @transform_3(%arg0: i32, %arg1: i32, %arg2: i32, %arg3: memref<8xi32, #tpu.memory_space<smem>>, %arg4: memref<1xi32, #tpu.memory_space<smem>>) -> (i32, i32, i32) {
    %0 = arith.index_cast %arg1 : i32 to index
    %1 = memref.load %arg3[%0] : memref<8xi32, #tpu.memory_space<smem>>
    %c0_i32 = arith.constant 0 : i32
    %c0_i32_0 = arith.constant 0 : i32
    return %1, %arg2, %c0_i32 : i32, i32, i32
  }
  func.func @transform_4(%arg0: i32, %arg1: i32, %arg2: i32, %arg3: memref<8xi32, #tpu.memory_space<smem>>, %arg4: memref<1xi32, #tpu.memory_space<smem>>) -> (i32, i32) {
    %c0_i32 = arith.constant 0 : i32
    %c0_i32_0 = arith.constant 0 : i32
    return %arg0, %c0_i32 : i32, i32
  }
  func.func @transform_5(%arg0: i32, %arg1: i32, %arg2: i32, %arg3: memref<8xi32, #tpu.memory_space<smem>>, %arg4: memref<1xi32, #tpu.memory_space<smem>>) -> (i32, i32) {
    %c0_i32 = arith.constant 0 : i32
    %c0_i32_0 = arith.constant 0 : i32
    return %arg0, %c0_i32 : i32, i32
  }
}

</mosaic_0001>

<bundles_post_ra>
// kernel: dbrx_moe_forward.1
= control target key start
LH: loop header
LB: loop body
LE: loop exit
PB: predicated region body
PF: predicated region fallthrough
CT: control target
= control target key end

     0   :  { %s1998_s0 = inlined_call_operand.vmem [shape: s32[8], index: 0, kind: input, shape index: {}]   ;;  %s1999_s1 = inlined_call_operand.<no memory space> [shape: s32[1], index: 1, kind: input, shape index: {}]   ;;  %s2000_s2 = inlined_call_operand.vmem [shape: bf16[32,128], index: 2, kind: input, shape index: {}]   ;;  %s2001_s3 = inlined_call_operand.vmem [shape: bf16[8,128,256], index: 3, kind: input, shape index: {}]   ;;  %s2002_s4 = inlined_call_operand.vmem [shape: bf16[8,128,256], index: 4, kind: input, shape index: {}]   ;;  %s2003_s5 = inlined_call_operand.vmem [shape: bf16[8,256,128], index: 5, kind: input, shape index: {}]   ;;  %s2004_s6 = inlined_call_operand.vmem [shape: f32[32,8], index: 6, kind: input, shape index: {}]   ;;  %s2005_s7 = inlined_call_operand.hbm [shape: f32[32,128], index: 7, kind: output, shape index: {}]  }
   0x1   :  { %2019 = sst [smem:[#allocation25_spill]] %s2000_s2  ;;  %s12_s26 = sshll.u32 %s1998_s0, 4  ;;  %s13_s26 = int_to_ptr.vmem [resolvable:$true] %s12_s26 }
   0x2   :  { %2020 = sst [smem:[#allocation26_spill]] %s2001_s3  ;;  %s1417_s29 = scalar_lea.vmem %s13_s26, 16 }
   0x3   :  { %2021 = sst [smem:[#allocation27_spill]] %s2002_s4  ;;  %p1418_p0 = scmp.ne.s32.totalorder %s13_s26, %s1417_s29 }
   0x4   :  { %2022 = sst [smem:[#allocation28_spill]] %s2003_s5  ;;  %p1422_p1 = scmp.lt.s32.totalorder %s13_s26, %s13_s26 }
   0x5   :  { %2023 = sst [smem:[#allocation29_spill]] %s2004_s6  ;;  %p1423_p2 = scmp.lt.s32.totalorder %s1417_s29, %s1417_s29 }
   0x6   :  { %2024 = sst [smem:[#allocation30_spill]] %s2005_s7 }
   0x7   :  { %16 = sst [smem:[#allocation4]] %s1999_s1  ;;  %p1424_p3 = por %p1423_p2, %p1422_p1 }
   0x9   :  { %p1425_p4 = pnand %p1424_p3, %p1418_p0 }
   0xb   :  { %1428 = shalt.err (!%p1425_p4)  }
   0xc   :  { %s1575_s30 = smov [#allocation3]  }
   0xd   :  { %15 = dma.vmem_to_smem %s13_s26, 16, %s1575_s30, [#allocation2] }
   0xe   :  { %1513 = dma.done.wait [#allocation2], 16 }
   0xf   :  { %1514 = vsyncadd [#allocation2], 4294967280 }
  0x10   :  { %18 = sfence }
  0x11   :  { %19 = vsyncpa [#allocation8], 0 }
  0x12   :  { %21 = vsyncpa [#allocation8 + $0x1], 0  ;;  %s1628_s0 = smov 0   ;;  %s1630_s8 = smov 0  }
  0x13   :  { %s1632_s1 = smov 0   ;;  %s1634_s9 = smov 0  }
  0x14   :  { %s1636_s10 = smov 0   ;;  %s1638_s11 = smov 0  }
  0x15   :  { %s1640_s12 = smov 0   ;;  %s1642_s13 = smov 0  }
  0x16   :  { %s1644_s14 = smov 0   ;;  %s1646_s15 = smov 0  }
  0x17   :  { %s1648_s16 = smov 0   ;;  %s1650_s17 = smov 0  }
  0x18   :  { %s1652_s18 = smov 0   ;;  %s1654_s19 = smov 0  }
  0x19 LB: > { %2025 = sst [smem:[#allocation11_spill]] %s1533_s9  ;;  %s1117_s20 = sadd.s32 4294967295, %s1573_s19   ;;  %s1573_s19 = sphi %s1654_s19, %s27_s19   ;;  %s1569_s18 = sphi %s1652_s18, %s2069_s18   ;;  %s1565_s17 = sphi %s1650_s17, %s2080_s17   ;;  %s1561_s16 = sphi %s1648_s16, %s2079_s16   ;;  %s1557_s15 = sphi %s1646_s15, %s2066_s15   ;;  %s1553_s14 = sphi %s1644_s14, %s2078_s14   ;;  %s1549_s13 = sphi %s1642_s13, %s2064_s13   ;;  %s1545_s12 = sphi %s1640_s12, %s2077_s12   ;;  %s1541_s11 = sphi %s1638_s11, %s2076_s11   ;;  %s1537_s10 = sphi %s1636_s10, %s2075_s10   ;;  %s1533_s9 = sphi %s1634_s9, %s2074_s9   ;;  %s1529_s1 = sphi %s1632_s1, %s2073_s1   ;;  %s1525_s8 = sphi %s1630_s8, %s2072_s8   ;;  %s1521_s0 = sphi %s1628_s0, %s2071_s0  }
  0x1a   : > { %2026 = sst [smem:[#allocation12_spill]] %s1541_s11  ;;  %s39_s22 = sadd.s32 1, %s1561_s16 }
  0x1b   : > { %2027 = sst [smem:[#allocation13_spill]] %s1545_s12  ;;  %s42_s23 = sadd.s32 1, %s1565_s17 }
  0x1c   : > { %2028 = sst [smem:[#allocation14_spill]] %s1549_s13  ;;  %p40_p5 = scmp.ge.s32.totalorder %s39_s22, 2 }
  0x1d   : > { %2029 = sst [smem:[#allocation15_spill]] %s1553_s14  ;;  %s46_s24 = sadd.s32 1, %s1569_s18 }
  0x1e   : > { %2030 = sst [smem:[#allocation16_spill]] %s1557_s15  ;;  %s2082_s22 = smov (%p40_p5, %s39_s22), 0 }
  0x1f   : > { %2031 = sst [smem:[#allocation17_spill]] %s1561_s16  ;;  %s2084_s23 = smov (!%p40_p5, %s42_s23), %s1565_s17 }
  0x20   : > { %2032 = sst [smem:[#allocation18_spill]] %s1565_s17  ;;  %s79_s27 = ssub.s32 %s1561_s16, %s2082_s22 }
  0x21   : > { %2033 = sst [smem:[#allocation19_spill]] %s1569_s18  ;;  %p90_p6 = scmp.ne.s32.totalorder %s1545_s12, %s1541_s11 }
  0x22   : > { %s76_s25 = sld [smem:[#allocation3 + %s1565_s17]]  ;;  %p44_p7 = scmp.ge.s32.totalorder %s2084_s23, 8 }
  0x23   : > { %2034 = sst [smem:[#allocation20_spill]] %s2082_s22  ;;  %p91_p8 = scmp.eq.s32.totalorder %s1573_s19, 0 }
  0x24   : > { %s106_s28 = sld [smem:[#allocation3 + %s1565_s17]]  ;;  %s113_s29 = sadd.s32 1, %s1537_s10 }
  0x25   : > { %s2086_s23 = smov (%p44_p7, %s2084_s23), 0  ;;  %s2088_s24 = smov (!%p44_p7, %s46_s24), %s1569_s18 }
  0x26   : > { %2035 = sst [smem:[#allocation21_spill]] %s2086_s23  ;;  %p1719_p9 = por %p91_p8, %p90_p6 }
  0x27   : > { %s77_s30 = sld [smem:[#allocation3 + %s2086_s23]]  ;;  %p48_p10 = scmp.ge.s32.totalorder %s2088_s24, 2 }
  0x28   : > { %s107_s26 = sld [smem:[#allocation3 + %s2086_s23]]  ;;  %p120_p11 = scmp.ne.s32.totalorder %s1537_s10, %s1533_s9 }
  0x29   : > { %s195_s22 = sadd.s32 1, %s1529_s1  ;;  %s2090_s24 = smov (%p48_p10, %s2088_s24), 0 }
  0x2a   : > { %2037 = sst [smem:[#allocation22_spill]] %s2090_s24  ;;  %p1729_p12 = por %p120_p11, %p91_p8 }
  0x2b   : > { %p205_p13 = scmp.ne.s32.totalorder %s1529_s1, %s1525_s8  ;;  %s192_s5 = ssub.s32 %s1569_s18, %s2090_s24 }
  0x2c   : > { %p206_p0 = scmp.eq.s32.totalorder %s1117_s20, 31  ;;  %p193_p1 = scmp.eq.s32.totalorder %s192_s5, 0 }
  0x2d   : > { %s78_s23 = ssub.s32 %s76_s25, %s77_s30  ;;  %s2040_s15 = sadd.s32 1, %s1545_s12 }
  0x2e   : > { %s80_s6 = sor.u32 %s79_s27, %s78_s23  ;;  %s108_s2 = ssub.s32 %s106_s28, %s107_s26 }
  0x2f   : > { %p81_p2 = scmp.eq.s32.totalorder %s80_s6, 0  ;;  %s110_s13 = sor.u32 %s108_s2, %s79_s27 }
  0x30   : > { %p111_p3 = scmp.eq.s32.totalorder %s110_s13, 0  ;;  %p1737_p4 = por %p206_p0, %p205_p13 }
  0x31   : > { %s1744_s9 = scalar_select %p81_p2, %s1545_s12, %s2040_s15  }
  0x32   : > { %s1747_s11 = scalar_select %p111_p3, %s1537_s10, %s113_s29  }
  0x33   : > { %2041 = sst [smem:[#allocation23_spill]] %s1744_s9  ;;  %p211_p5 = scmp.ne.s32.totalorder %s1525_s8, %s1521_s0 }
  0x34   : > { %2042 = sst [smem:[#allocation24_spill]] %s1747_s11  ;;  %s2043_s20 = sadd.s32 4294967294, %s1573_s19  }
  0x35   : > { %s1750_s4 = scalar_select %p193_p1, %s1529_s1, %s195_s22  }
  0x36   : > { %p212_p6 = scmp.eq.s32.totalorder %s2043_s20, 31  ;;  %p1120_p8 = scmp.ge.s32.totalorder %s1573_s19, 32 }
  0x38   : > { %p1756_p7 = por %p212_p6, %p211_p5  ;;  %228 = sbr.rel (%p1120_p8) target bundleno = 105 (0x69), region = 16 }
  0x3f   : > { %240 = sbr.rel (!%p1719_p9) target bundleno = 84 (0x54), region = 24  ;;  %s245_s2 = sld [smem:[#allocation3 + %s1565_s17]] (%p1719_p9) }
  0x40   : > { %s242_s6 = sand.u32 (%p1719_p9), 1, %s1545_s12   ;;  %s2045_s3 = sld [smem:[#allocation26_spill]] (%p1719_p9) }
  0x41   : > { %s1121_s13 = sshll.u32 (%p1719_p9), %s242_s6, 6 }
  0x42   : > { %s244_s21 = scalar_lea.vmem (%p1719_p9), [#allocation5], %s1121_s13 }
  0x45   : > { %s1122_s15 = sshll.u32 (%p1719_p9), %s245_s2, 5 }
  0x46   : > { %s247_s22 = sadd.s32 %s1561_s16, %s1122_s15 }
  0x47   : > { %s1123_s23 = sshll.u32 %s247_s22, 2 }
  0x48   : > { %s1769_s27 = scalar_lea.vmem %s2045_s3, %s1123_s23 }
  0x49   : > { %v265_v0 = vld [vmem:[%s1769_s27] sm:$0xf]  ;;  %v267_v1 = vld [vmem:[%s1769_s27 + $0x8] sm:$0xf]  ;;  %v269_v2 = vld [vmem:[%s1769_s27 + $0x10] sm:$0xf] }
  0x4a   : > { %266 = vst [vmem:[%s244_s21] sm:$0xf] %v265_v0  ;;  %268 = vst [vmem:[%s244_s21 + $0x4] sm:$0xf] %v267_v1  ;;  %v271_v3 = vld [vmem:[%s1769_s27 + $0x18] sm:$0xf] }
  0x4b   : > { %270 = vst [vmem:[%s244_s21 + $0x8] sm:$0xf] %v269_v2  ;;  %v273_v4 = vld [vmem:[%s1769_s27 + $0x20] sm:$0xf]  ;;  %v275_v5 = vld [vmem:[%s1769_s27 + $0x28] sm:$0xf] }
  0x4c   : > { %272 = vst [vmem:[%s244_s21 + $0xc] sm:$0xf] %v271_v3  ;;  %274 = vst [vmem:[%s244_s21 + $0x10] sm:$0xf] %v273_v4  ;;  %v277_v6 = vld [vmem:[%s1769_s27 + $0x30] sm:$0xf] }
  0x4d   : > { %276 = vst [vmem:[%s244_s21 + $0x14] sm:$0xf] %v275_v5  ;;  %v279_v7 = vld [vmem:[%s1769_s27 + $0x38] sm:$0xf]  ;;  %v281_v8 = vld [vmem:[%s1769_s27 + $0x40] sm:$0xf] }
  0x4e   : > { %278 = vst [vmem:[%s244_s21 + $0x18] sm:$0xf] %v277_v6  ;;  %280 = vst [vmem:[%s244_s21 + $0x1c] sm:$0xf] %v279_v7  ;;  %v283_v9 = vld [vmem:[%s1769_s27 + $0x48] sm:$0xf] }
  0x4f   : > { %282 = vst [vmem:[%s244_s21 + $0x20] sm:$0xf] %v281_v8  ;;  %v285_v10 = vld [vmem:[%s1769_s27 + $0x50] sm:$0xf]  ;;  %v287_v11 = vld [vmem:[%s1769_s27 + $0x58] sm:$0xf] }
  0x50   : > { %284 = vst [vmem:[%s244_s21 + $0x24] sm:$0xf] %v283_v9  ;;  %286 = vst [vmem:[%s244_s21 + $0x28] sm:$0xf] %v285_v10  ;;  %v289_v12 = vld [vmem:[%s1769_s27 + $0x60] sm:$0xf] }
  0x51   : > { %288 = vst [vmem:[%s244_s21 + $0x2c] sm:$0xf] %v287_v11  ;;  %v291_v13 = vld [vmem:[%s1769_s27 + $0x68] sm:$0xf]  ;;  %v293_v14 = vld [vmem:[%s1769_s27 + $0x70] sm:$0xf] }
  0x52   : > { %290 = vst [vmem:[%s244_s21 + $0x30] sm:$0xf] %v289_v12  ;;  %292 = vst [vmem:[%s244_s21 + $0x34] sm:$0xf] %v291_v13  ;;  %v295_v15 = vld [vmem:[%s1769_s27 + $0x78] sm:$0xf] }
  0x53   : > { %294 = vst [vmem:[%s244_s21 + $0x38] sm:$0xf] %v293_v14  ;;  %296 = vst [vmem:[%s244_s21 + $0x3c] sm:$0xf] %v295_v15 }
  0x54 PF: > { %351 = sbr.rel (!%p1729_p12) target bundleno = 105 (0x69), region = 65  ;;  %s356_s28 = sld [smem:[#allocation3 + %s1565_s17]] (%p1729_p12) }
  0x55   : > { %s353_s29 = sand.u32 (%p1729_p12), 1, %s1537_s10   ;;  %s2046_s22 = sld [smem:[#allocation27_spill]] (%p1729_p12) }
  0x56   : > { %s1124_s30 = sshll.u32 (%p1729_p12), %s353_s29, 6 }
  0x57   : > { %s355_s7 = scalar_lea.vmem (%p1729_p12), [#allocation6], %s1124_s30 }
  0x5a   : > { %s1125_s20 = sshll.u32 (%p1729_p12), %s356_s28, 5 }
  0x5b   : > { %s358_s2 = sadd.s32 %s1561_s16, %s1125_s20 }
  0x5c   : > { %s1126_s6 = sshll.u32 %s358_s2, 2 }
  0x5d   : > { %s1795_s23 = scalar_lea.vmem %s2046_s22, %s1126_s6 }
  0x5e   : > { %v376_v16 = vld [vmem:[%s1795_s23] sm:$0xf]  ;;  %v378_v17 = vld [vmem:[%s1795_s23 + $0x8] sm:$0xf]  ;;  %v380_v18 = vld [vmem:[%s1795_s23 + $0x10] sm:$0xf] }
  0x5f   : > { %377 = vst [vmem:[%s355_s7] sm:$0xf] %v376_v16  ;;  %379 = vst [vmem:[%s355_s7 + $0x4] sm:$0xf] %v378_v17  ;;  %v382_v19 = vld [vmem:[%s1795_s23 + $0x18] sm:$0xf] }
  0x60   : > { %381 = vst [vmem:[%s355_s7 + $0x8] sm:$0xf] %v380_v18  ;;  %v384_v20 = vld [vmem:[%s1795_s23 + $0x20] sm:$0xf]  ;;  %v386_v21 = vld [vmem:[%s1795_s23 + $0x28] sm:$0xf] }
  0x61   : > { %383 = vst [vmem:[%s355_s7 + $0xc] sm:$0xf] %v382_v19  ;;  %385 = vst [vmem:[%s355_s7 + $0x10] sm:$0xf] %v384_v20  ;;  %v388_v22 = vld [vmem:[%s1795_s23 + $0x30] sm:$0xf] }
  0x62   : > { %387 = vst [vmem:[%s355_s7 + $0x14] sm:$0xf] %v386_v21  ;;  %v390_v23 = vld [vmem:[%s1795_s23 + $0x38] sm:$0xf]  ;;  %v392_v24 = vld [vmem:[%s1795_s23 + $0x40] sm:$0xf] }
  0x63   : > { %389 = vst [vmem:[%s355_s7 + $0x18] sm:$0xf] %v388_v22  ;;  %391 = vst [vmem:[%s355_s7 + $0x1c] sm:$0xf] %v390_v23  ;;  %v394_v25 = vld [vmem:[%s1795_s23 + $0x48] sm:$0xf] }
  0x64   : > { %393 = vst [vmem:[%s355_s7 + $0x20] sm:$0xf] %v392_v24  ;;  %v396_v26 = vld [vmem:[%s1795_s23 + $0x50] sm:$0xf]  ;;  %v398_v27 = vld [vmem:[%s1795_s23 + $0x58] sm:$0xf] }
  0x65   : > { %395 = vst [vmem:[%s355_s7 + $0x24] sm:$0xf] %v394_v25  ;;  %397 = vst [vmem:[%s355_s7 + $0x28] sm:$0xf] %v396_v26  ;;  %v400_v28 = vld [vmem:[%s1795_s23 + $0x60] sm:$0xf] }
  0x66   : > { %399 = vst [vmem:[%s355_s7 + $0x2c] sm:$0xf] %v398_v27  ;;  %v402_v29 = vld [vmem:[%s1795_s23 + $0x68] sm:$0xf]  ;;  %v404_v30 = vld [vmem:[%s1795_s23 + $0x70] sm:$0xf] }
  0x67   : > { %401 = vst [vmem:[%s355_s7 + $0x30] sm:$0xf] %v400_v28  ;;  %403 = vst [vmem:[%s355_s7 + $0x34] sm:$0xf] %v402_v29  ;;  %v406_v31 = vld [vmem:[%s1795_s23 + $0x78] sm:$0xf] }
  0x68   : > { %405 = vst [vmem:[%s355_s7 + $0x38] sm:$0xf] %v404_v30  ;;  %407 = vst [vmem:[%s355_s7 + $0x3c] sm:$0xf] %v406_v31 }
  0x69 PF: > { %p1127_p9 = scmp.ge.s32.totalorder %s1573_s19, 1  ;;  %p485_p10 = scmp.lt.s32.totalorder %s1573_s19, 33 }
  0x6b   : > { %p486_p11 = pnand %p1127_p9, %p485_p10 }
  0x6c   : > { %s2047_s25 = sld [smem:[#allocation12_spill]] (!%p486_p11)  ;;  %s2048_s26 = sld [smem:[#allocation11_spill]] (!%p486_p11) }
  0x6d   : > { %489 = sbr.rel (%p486_p11) target bundleno = 667 (0x29b), region = 114  ;;  %s2049_s27 = sld [smem:[#allocation16_spill]] (!%p486_p11) }
  0x6e   : > { %s2050_s21 = sld [smem:[#allocation15_spill]] (!%p486_p11)  ;;  %s2051_s28 = sld [smem:[#allocation14_spill]] (!%p486_p11) }
  0x6f   : > { %s2016_s6 = sand.u32 (!%p486_p11), 1, %s1525_s8   ;;  %s2052_s18 = sld [smem:[#allocation25_spill]] (!%p486_p11) }
  0x70   : > { %s1130_s15 = sshll.u32 (!%p486_p11), %s2016_s6, 4  ;;  %s2054_s11 = sld [smem:[#allocation28_spill]] (!%p486_p11) }
  0x72   : > { %s492_s29 = sand.u32 (!%p486_p11), 1, %s2047_s25   ;;  %s499_s30 = sand.u32 (!%p486_p11), 1, %s2048_s26  }
  0x73   : > { %s1128_s20 = sshll.u32 (!%p486_p11), %s492_s29, 6  ;;  %s1129_s2 = sshll.u32 (!%p486_p11), %s499_s30, 6 }
  0x74   : > { %s1131_s13 = sshll.u32 %s2049_s27, 1  ;;  %s558_s22 = sld [smem:[#allocation3 + %s2050_s21]] }
  0x75   : > { %p551_p12 = scmp.lt.s32.totalorder %s1131_s13, 3  ;;  %s1133_s23 = sshll.u32 %s2051_s28, 4 }
  0x76   : > { %p578_p13 = scmp.eq.s32.totalorder %s2050_s21, 0  ;;  %p562_p0 = scmp.lt.s32.totalorder %s1133_s23, 31 }
  0x77   : > { %s2092_s13 = smov (!%p551_p12, %s1131_s13), 3  ;;  %s2053_s27 = sld [smem:[#allocation29_spill]] }
  0x78   : > { %s1132_s7 = sshll.u32 %s2092_s13, 2  ;;  %s1137_s25 = sshll.u32 %s2092_s13, 3 }
  0x79   : > { %s1827_s17 = scalar_lea.vmem %s2052_s18, %s1132_s7  ;;  %s2094_s23 = smov (!%p562_p0, %s1133_s23), 31 }
  0x7a   : > { %p560_p1 = scmp.lt.s32.totalorder %s558_s22, 7  ;;  %p579_p2 = scmp.eq.s32.totalorder %s2051_s28, 0 }
  0x7b   : > { %s1840_s18 = scalar_lea.vmem [#allocation5], %s1128_s20  ;;  %s1842_s24 = scalar_lea.vmem [#allocation6], %s1129_s2 }
  0x7c   : > { %s2096_s22 = smov (!%p560_p1, %s558_s22), 7  ;;  %p580_p3 = pnand %p579_p2, %p578_p13 }
  0x7d   : > { %s1832_s30 = scalar_lea.vmem %s2053_s27, %s1137_s25  ;;  %s1134_s6 = sshll.u32 %s2096_s22, 5  ;;  %v1576_v32 = vmov (!%p580_p3), 0.0  }
  0x7e   : > { %s565_s21 = sadd.s32 %s1134_s6, %s2094_s23  ;;  %s1844_s13 = scalar_lea.vmem [#allocation7], %s1130_s15 }
  0x7f   : > { %s1135_s16 = sshll.u32 %s565_s21, 2  ;;  %583 = sbr.rel (%p580_p3) target bundleno = 134 (0x86), region = 126  ;;  %584 = vst [vmem:[%s1844_s13] sm:$0xff] (!%p580_p3), %v1576_v32  ;;  %585 = vst [vmem:[%s1844_s13 + $0x8] sm:$0xff] (!%p580_p3), %v1576_v32 }
  0x80   : > { %s1838_s3 = scalar_lea.vmem %s2054_s11, %s1135_s16 }
  0x86 PF: > { %s586_s28 = sld [smem:[#allocation4]]  ;;  %s2055_s6 = sld [smem:[#allocation15_spill]] }
  0x8c   : > { %p1138_p5 = scmp.ge.s32.totalorder %s2055_s6, %s586_s28 }
  0x8d   : > { %v1384_v33 = vld [vmem:[%s1840_s18] sm:$0xff] (!%p1138_p5)   ;;  %v1577_v34 = vmov (!%p1138_p5), 0.0   ;;  %v1385_v35 = vld [vmem:[%s1840_s18 + $0x8] sm:$0xff] (!%p1138_p5)   ;;  %vm1578_vm0 = vmmov (!%p1138_p5), 0   ;;  %v1386_v36 = vld [vmem:[%s1840_s18 + $0x10] sm:$0xff] (!%p1138_p5)   ;;  %s2056_s9 = sld [smem:[#allocation15_spill]] (!%p1138_p5)  ;;  %v931_v59 = vlaneseq (!%p1138_p5) }
  0x8e   : > { %590 = sbr.rel (%p1138_p5) target bundleno = 639 (0x27f), region = 130  ;;  %1199 = vmatprep.subr.bf16.mxu0 (!%p1138_p5), %v1577_v34  ;;  %1219 = vmatprep.subr.bf16.mxu1 (!%p1138_p5), %v1577_v34  ;;  %v1391_v37 = vld [vmem:[%s1842_s24] sm:$0xff] (!%p1138_p5)   ;;  %v1393_v38 = vld [vmem:[%s1842_s24 + $0x8] sm:$0xff] (!%p1138_p5)   ;;  %v1387_v39 = vld [vmem:[%s1840_s18 + $0x18] sm:$0xff] (!%p1138_p5)   ;;  %vm939_vm1 = vcmask (!%p1138_p5), 64512  }
  0x8f   : > { %1200 = vmatpush3.bf16.msra.mxu0 (!%p1138_p5), %v1384_v33  ;;  %1215 = vmatprep.mubr.msk.bf16.mxu0 (!%p1138_p5), %vm1578_vm0, %v1577_v34  ;;  %v1395_v40 = vld [vmem:[%s1842_s24 + $0x10] sm:$0xff] (!%p1138_p5)   ;;  %v1388_v41 = vld [vmem:[%s1840_s18 + $0x20] sm:$0xff] (!%p1138_p5)   ;;  %v1389_v42 = vld [vmem:[%s1840_s18 + $0x28] sm:$0xff] (!%p1138_p5)   ;;  %v932_v61 = vand.u32 (!%p1138_p5), 127, %v931_v59 }
  0x90   : > { %1201 = vmatprep.subr.bf16.mxu0 (!%p1138_p5), %v1577_v34  ;;  %1235 = vmatprep.mubr.msk.bf16.mxu1 (!%p1138_p5), %vm1578_vm0, %v1577_v34  ;;  %v1396_v43 = vld [vmem:[%s1842_s24 + $0x18] sm:$0xff] (!%p1138_p5)   ;;  %v1397_v44 = vld [vmem:[%s1842_s24 + $0x20] sm:$0xff] (!%p1138_p5)   ;;  %v1390_v45 = vld [vmem:[%s1840_s18 + $0x30] sm:$0xff] (!%p1138_p5)  }
  0x91   : > { %1220 = vmatpush3.bf16.msra.mxu1 (!%p1138_p5), %v1391_v37  ;;  %v1398_v46 = vld [vmem:[%s1842_s24 + $0x28] sm:$0xff] (!%p1138_p5)   ;;  %v1392_v47 = vld [vmem:[%s1840_s18 + $0x38] sm:$0xff] (!%p1138_p5)   ;;  %v1399_v49 = vld [vmem:[%s1842_s24 + $0x30] sm:$0xff] (!%p1138_p5)  }
  0x92   : > { %1221 = vmatprep.subr.bf16.mxu1 (!%p1138_p5), %v1577_v34  ;;  %v1394_v48 = vld [vmem:[%s1827_s17] sm:$0xff] (!%p1138_p5)   ;;  %v1402_v52 = vld [vmem:[%s1838_s3 + $0x8] sm:$0xff] (!%p1138_p5)   ;;  %v1403_v53 = vld [vmem:[%s1838_s3 + $0x10] sm:$0xff] (!%p1138_p5)  }
  0x93   : > { %1202 = vmatpush3.bf16.msra.mxu0 (!%p1138_p5), %v1385_v35  ;;  %v1400_v50 = vld [vmem:[%s1842_s24 + $0x38] sm:$0xff] (!%p1138_p5)   ;;  %v1404_v54 = vld [vmem:[%s1838_s3 + $0x18] sm:$0xff] (!%p1138_p5)   ;;  %v1406_v56 = vld [vmem:[%s1838_s3 + $0x28] sm:$0xff] (!%p1138_p5)   ;;  %v933_v60 = vstv (!%p1138_p5), %s2056_s9 }
  0x94   : > { %1203 = vmatprep.subr.bf16.mxu0 (!%p1138_p5), %v1577_v34  ;;  %v1401_v51 = vld [vmem:[%s1838_s3] sm:$0xff] (!%p1138_p5)   ;;  %v1407_v57 = vld [vmem:[%s1838_s3 + $0x30] sm:$0xff] (!%p1138_p5)   ;;  %v1408_v58 = vld [vmem:[%s1838_s3 + $0x38] sm:$0xff] (!%p1138_p5)   ;;  %vm934_vm2 = vcmp.eq.s32.totalorder (!%p1138_p5), %v932_v61, %v933_v60 }
  0x95   : > { %1222 = vmatpush3.bf16.msra.mxu1 %v1393_v38  ;;  %v1405_v55 = vld [vmem:[%s1838_s3 + $0x20] sm:$0xff]   ;;  %v936_v63 = vld [vmem:[%s1832_s30 + $0x8] sm:$0xff] }
  0x96   : > { %1223 = vmatprep.subr.bf16.mxu1 %v1577_v34  ;;  %v935_v62 = vld [vmem:[%s1832_s30] sm:$0xff]  ;;  %v938_v1 = vsel %vm934_vm2, %v936_v63, 0.0  ;;  %v946_v27 = vld [vmem:[%s1844_s13] sm:$0xff] }
  0x97   : > { %1204 = vmatpush3.bf16.msra.mxu0 %v1386_v36  ;;  %v937_v0 = vsel %vm934_vm2, %v935_v62, 0.0  ;;  %v943_v3 = vsel %vm939_vm1, %v938_v1, 0.0  ;;  %v947_v32 = vld [vmem:[%s1844_s13 + $0x8] sm:$0xff] }
  0x98   : > { %1205 = vmatprep.subr.bf16.mxu0 %v1577_v34  ;;  %v940_v2 = vsel %vm939_vm1, %v937_v0, 0.0 }
  0x99   : > { %1224 = vmatpush3.bf16.msra.mxu1 %v1395_v40  ;;  %941 = vadd.xlane.f32.xlu0 %v940_v2 }
  0x9a   : > { %1225 = vmatprep.subr.bf16.mxu1 %v1577_v34 }
  0x9b   : > { %1206 = vmatpush3.bf16.msra.mxu0 %v1387_v39 }
  0x9c   : > { %1207 = vmatprep.subr.bf16.mxu0 %v1577_v34 }
  0x9d   : > { %1226 = vmatpush3.bf16.msra.mxu1 %v1396_v43  ;;  %944 = vadd.xlane.f32.xlu0 %v943_v3 }
  0x9e   : > { %1227 = vmatprep.subr.bf16.mxu1 %v1577_v34 }
  0x9f   : > { %1208 = vmatpush3.bf16.msra.mxu0 %v1388_v41 }
  0xa0   : > { %1209 = vmatprep.subr.bf16.mxu0 %v1577_v34 }
  0xa1   : > { %1228 = vmatpush3.bf16.msra.mxu1 %v1397_v44 }
  0xa2   : > { %1229 = vmatprep.subr.bf16.mxu1 %v1577_v34 }
  0xa3   : > { %1210 = vmatpush3.bf16.msra.mxu0 %v1389_v42 }
  0xa4   : > { %1211 = vmatprep.subr.bf16.mxu0 %v1577_v34 }
  0xa5   : > { %1230 = vmatpush3.bf16.msra.mxu1 %v1398_v46 }
  0xa6   : > { %1231 = vmatprep.subr.bf16.mxu1 %v1577_v34 }
  0xa7   : > { %1212 = vmatpush3.bf16.msra.mxu0 %v1390_v45 }
  0xa8   : > { %1213 = vmatprep.subr.bf16.mxu0 %v1577_v34 }
  0xa9   : > { %1232 = vmatpush3.bf16.msra.mxu1 %v1399_v49 }
  0xaa   : > { %1233 = vmatprep.subr.bf16.mxu1 %v1577_v34 }
  0xab   : > { %1214 = vmatpush3.bf16.msra.mxu0 %v1392_v47 }
  0xac   : > { %1239 = vmatprep.subr.bf16.mxu0 %v1577_v34 }
  0xad   : > { %1234 = vmatpush3.bf16.msra.mxu1 %v1400_v50 }
  0xae   : > { %1216 = vmatmul.mubr.bf16.vlgmr.msra.gmra.mrb[0].mxu0 %v1394_v48 }
  0xaf   : > { %1255 = vmatprep.mubr.msk.bf16.mxu0 %vm1578_vm0, %v1577_v34  ;;  %1240 = vmatpush3.bf16.msra.mxu0 %v1401_v51 }
  0xb0   : > { %1236 = vmatmul.mubr.bf16.vlgmr.msra.gmra.mrb[0].mxu1 %v1394_v48  ;;  %1241 = vmatprep.subr.bf16.mxu0 %v1577_v34 }
  0xb3   : > { %1242 = vmatpush3.bf16.msra.mxu0 %v1402_v52 }
  0xb4   : > { %1243 = vmatprep.subr.bf16.mxu0 %v1577_v34 }
  0xb7   : > { %1244 = vmatpush3.bf16.msra.mxu0 %v1403_v53 }
  0xb8   : > { %1245 = vmatprep.subr.bf16.mxu0 %v1577_v34 }
  0xbb   : > { %1246 = vmatpush3.bf16.msra.mxu0 %v1404_v54 }
  0xbc   : > { %1247 = vmatprep.subr.bf16.mxu0 %v1577_v34 }
  0xbf   : > { %1248 = vmatpush3.bf16.msra.mxu0 %v1405_v55 }
  0xc0   : > { %1249 = vmatprep.subr.bf16.mxu0 %v1577_v34 }
  0xc3   : > { %1250 = vmatpush3.bf16.msra.mxu0 %v1406_v56 }
  0xc4   : > { %1251 = vmatprep.subr.bf16.mxu0 %v1577_v34 }
  0xc7   : > { %1252 = vmatpush3.bf16.msra.mxu0 %v1407_v57 }
  0xc8   : > { %1253 = vmatprep.subr.bf16.mxu0 %v1577_v34 }
  0xcb   : > { %1254 = vmatpush3.bf16.msra.mxu0 %v1408_v58 }
 0x126   : > { %v942_v25 = vpop.xlane.xlu0 %941 }
 0x12a   : > { %v945_v28 = vpop.xlane.xlu0 %944 }
 0x181   : > { %v697_v4 = vpop.f32.mrb[0].mxu0 }
 0x182   : > { %v1156_v5 = vmul.f32 -1.442695, %v697_v4  ;;  %v1217_v6 = vpop.f32.mrb[1].mxu0 }
 0x183   : > { %v700_v7 = vpop.f32.mrb[2].mxu0  ;;  %v802_v10 = vpop.f32.mrb[0].mxu1 }
 0x184   : > { %1409 = vpow2.f32 %v1156_v5  ;;  %v1157_v8 = vmul.f32 -1.442695, %v700_v7  ;;  %v1218_v9 = vpop.f32.mrb[3].mxu0  ;;  %v1237_v11 = vpop.f32.mrb[1].mxu1 }
 0x185   : > { %v805_v12 = vpop.f32.mrb[2].mxu1 }
 0x186   : > { %1411 = vpow2.f32 %v1157_v8  ;;  %v1238_v13 = vpop.f32.mrb[3].mxu1 }
 0x18e   : > { %v1410_v14 = vpop.eup %1409 }
 0x18f   : > { %v815_v15 = vadd.f32 1.0, %v1410_v14 }
 0x190   : > { %v1412_v16 = vpop.eup %1411 }
 0x191   : > { %1413 = vrcp.f32 %v815_v15  ;;  %v816_v17 = vadd.f32 1.0, %v1412_v16 }
 0x193   : > { %1415 = vrcp.f32 %v816_v17 }
 0x19b   : > { %v1414_v18 = vpop.eup %1413 }
 0x19c   : > { %v821_v19 = vmul.f32 %v1414_v18, %v697_v4 }
 0x19d   : > { %v1416_v20 = vpop.eup %1415 }
 0x19e   : > { %v822_v21 = vmul.f32 %v1416_v20, %v700_v7  ;;  %v823_v22 = vmul.f32 %v821_v19, %v802_v10 }
 0x1a0   : > { %v824_v23 = vmul.f32 %v822_v21, %v805_v12 }
 0x1a2   : > { %v825_v24 = vpack.c.bf16 %v824_v23, %v823_v22 }
 0x1a4   : > { %1256 = vmatmul.mubr.bf16.vlgmr.msra.gmra.mrb[4].mxu0 %v825_v24 }
 0x277   : > { %v924_v26 = vpop.f32.mrb[4].mxu0 }
 0x278   : > { %v948_v29 = vmul.f32 %v942_v25, %v924_v26  ;;  %v1257_v30 = vpop.f32.mrb[5].mxu0 }
 0x279   : > { %v927_v31 = vpop.f32.mrb[6].mxu0 }
 0x27a   : > { %v950_v33 = vadd.f32 %v948_v29, %v946_v27  ;;  %v949_v34 = vmul.f32 %v945_v28, %v927_v31  ;;  %v1258_v35 = vpop.f32.mrb[7].mxu0 }
 0x27c   : > { %952 = vst [vmem:[%s1844_s13] sm:$0xff] %v950_v33  ;;  %v951_v36 = vadd.f32 %v949_v34, %v947_v32 }
 0x27e   : > { %953 = vst [vmem:[%s1844_s13 + $0x8] sm:$0xff] %v951_v36 }
 0x27f PF: > { %s2057_s11 = sld [smem:[#allocation16_spill]]  ;;  %s2058_s20 = sld [smem:[#allocation30_spill]] }
 0x280   : > { %s968_s15 = sshll.u32 %s1844_s13, 4  ;;  %s2059_s22 = sand.u32 1, %s1525_s8   ;;  %s1918_s15 = int_to_ptr.vmem [resolvable:$true] %s968_s15 }
 0x281   : > { %s1922_s23 = scalar_lea.sflag [#allocation8], %s2059_s22  ;;  %s1429_s7 = scalar_lea.vmem %s1918_s15, 256 }
 0x282   : > { %p1430_p6 = scmp.ne.s32.totalorder %s1918_s15, %s1429_s7  ;;  %s1579_s25 = smov [#allocation7]  }
 0x283   : > { %s1433_s26 = sshll.u32 %s1579_s25, 4  ;;  %s1434_s26 = int_to_ptr.vmem [resolvable:$false] %s1433_s26 }
 0x284   : > { %p1431_p8 = pnand %p1430_p6, %p1737_p4  ;;  %s1435_s29 = scalar_lea.vmem %s1434_s26, 512 }
 0x285   : > { %s1171_s12 = sshll.u32 %s2057_s11, 8  ;;  %p1436_p10 = scmp.lt.s32.totalorder %s1918_s15, %s1434_s26 }
 0x286   : > { %s1915_s2 = scalar_lea.hbm %s2058_s20, %s1171_s12  ;;  %p1432_p9 = pneg %p1431_p8 }
 0x287   : > { %p1437_p11 = scmp.lt.s32.totalorder %s1435_s29, %s1429_s7 }
 0x289   : > { %p1438_p12 = por %p1437_p11, %p1436_p10 }
 0x28b   : > { %p1439_p13 = pnand %p1438_p12, %p1432_p9 }
 0x28d   : > { %1442 = shalt.err (!%p1439_p13)
}
 0x28e   : > { %s1443_s27 = scalar_lea.hbm %s1915_s2, 256  ;;  %s1447_s3 = scalar_lea.hbm %s2058_s20, 512 }
 0x28f   : > { %p1444_p0 = scmp.ne.s32.totalorder %s1915_s2, %s1443_s27  ;;  %p1448_p3 = scmp.lt.u32.totalorder %s1915_s2, %s2058_s20 }
 0x290   : > { %p1449_p5 = scmp.lt.u32.totalorder %s1447_s3, %s1443_s27  ;;  %p1451_p8 = scmp.lt.u32.totalorder %s1443_s27, %s1915_s2 }
 0x291   : > { %p1445_p1 = pnand %p1444_p0, %p1737_p4 }
 0x292   : > { %p1450_p6 = por %p1449_p5, %p1448_p3 }
 0x293   : > { %p1446_p2 = pneg %p1445_p1 }
 0x294   : > { %p1452_p9 = por %p1451_p8, %p1450_p6 }
 0x296   : > { %p1453_p10 = pnand %p1452_p9, %p1446_p2 }
 0x298   : > { %1456 = shalt.err (!%p1453_p10)
}
 0x299   : > { %s1580_s13 = smov 128   ;;  %s1581_s28 = smov 8  }
 0x29a   : > { %1259 = dma.vmem_to_hbm [thread:$0]  (%p1737_p4), %s1918_s15, 256, %s1915_s2, %s1922_s23, %s1580_s13, %s1580_s13, %s1581_s28  }
 0x29b PF: > { %p1265_p11 = scmp.ge.s32.totalorder %s1573_s19, 2  ;;  %s983_s6 = sand.u32 1, %s1521_s0  }
 0x29c   : > { %s984_s9 = scalar_lea.sflag [#allocation8], %s983_s6 }
 0x29d   : > { %p1262_p12 = pnand %p1265_p11, %p1756_p7 }
 0x29f   : > { %1516 = dma.done.wait (!%p1262_p12), %s984_s9, 256  }
 0x2a0   : > { %1518 = vsyncadd (!%p1262_p12), %s984_s9, 4294967040  ;;  %s27_s19 = sadd.s32 1, %s1573_s19   ;;  %s2061_s14 = sld [smem:[#allocation24_spill]] }
 0x2a1   : > { %p1951_p13 = scmp.ge.s32.totalorder %s27_s19, 34   ;;  %s2062_s12 = sld [smem:[#allocation13_spill]] }
 0x2a2   : > { %s2063_s16 = sld [smem:[#allocation23_spill]]  ;;  %s2064_s13 = sld [smem:[#allocation17_spill]] }
 0x2a3   : > { %s2065_s17 = sld [smem:[#allocation18_spill]]  ;;  %s2066_s15 = sld [smem:[#allocation19_spill]] }
 0x2a4   : > { %s2067_s5 = sld [smem:[#allocation20_spill]]  ;;  %s2068_s2 = sld [smem:[#allocation21_spill]] }
 0x2a5   : > { %s2069_s18 = sld [smem:[#allocation22_spill]]  ;;  %s2071_s0 = smov %s1525_s8 }
 0x2a6   : > { %s2072_s8 = smov %s1529_s1  ;;  %s2073_s1 = smov %s1750_s4 }
 0x2a7   : > { %s2074_s9 = smov %s1537_s10  ;;  %s2075_s10 = smov %s2061_s14 }
 0x2a8   : > { %s2076_s11 = smov %s2062_s12  ;;  %s2077_s12 = smov %s2063_s16 }
 0x2a9   : > { %s2078_s14 = smov %s2065_s17  ;;  %26 = sbr.rel (!%p1951_p13) target bundleno = 25 (0x19), region = 187 }
 0x2aa   : > { %s2079_s16 = smov %s2067_s5  ;;  %s2080_s17 = smov %s2068_s2 }
 0x2b0   :  { %989 = vsyncpa [#allocation8], 1 }
 0x2b1   :  { %991 = vsyncpa [#allocation8 + $0x1], 1 }

</bundles_post_ra>
